<compile_context>
chip_gen: v7x
topology: tpu7x:2x2x1
jax: 0.10.0
libtpu: 0.0.40
codegen_flags: <defaults>
</compile_context>

<pallas_src>
import functools

import jax
import jax.numpy as jnp
from jax import lax
from jax.experimental import pallas as pl
from jax.experimental.pallas import tpu as pltpu


# ---------------------------------------------------------------------------
# Single-block kernel: whole problem in one VMEM tile (small N, margin > 0).
# Returns sum(cost_s**2) only; diag term / normalization live in the wrapper.
# ---------------------------------------------------------------------------
def _l2_cost_sq_single_kernel(f1_ref, f2_ref, out_ref, *, margin, max_violation):
    f1 = f1_ref[...]                      # (N, Dp) native dtype (bf16 OK for MXU)
    f2 = f2_ref[...]                      # (N, Dp)
    n = f1.shape[0]

    f1f = f1.astype(jnp.float32)
    f2f = f2.astype(jnp.float32)
    sq1 = jnp.sum(f1f * f1f, axis=1, keepdims=True)                   # (N, 1)
    sq2 = jnp.sum(f2f * f2f, axis=1, keepdims=True)                   # (N, 1)

    # NT contraction: no explicit transpose of f2, MXU fed directly.
    cross = lax.dot_general(f1, f2, (((1,), (1,)), ((), ())),
                            preferred_element_type=jnp.float32)       # (N, N)
    d2 = jnp.maximum(sq1 + jnp.transpose(sq2) - 2.0 * cross, 0.0)

    row = lax.broadcasted_iota(jnp.int32, (n, n), 0)
    col = lax.broadcasted_iota(jnp.int32, (n, n), 1)
    cost = jnp.where(row == col, 0.0,
                     jnp.maximum(jnp.float32(margin) - jnp.sqrt(d2), 0.0))
    if max_violation:
        cost = jnp.max(cost, axis=1, keepdims=True)                   # (N, 1)
    out_ref[0, 0] = jnp.sum(cost * cost)


def _single_block_cost_sq(f1, f2, *, margin, max_violation):
    kernel = functools.partial(
        _l2_cost_sq_single_kernel, margin=margin, max_violation=max_violation
    )
    out = pl.pallas_call(
        kernel,
        out_shape=jax.ShapeDtypeStruct((1, 1), jnp.float32),
        in_specs=[
            pl.BlockSpec(memory_space=pltpu.MemorySpace.VMEM),
            pl.BlockSpec(memory_space=pltpu.MemorySpace.VMEM),
        ],
        out_specs=pl.BlockSpec(memory_space=pltpu.MemorySpace.SMEM),
    )(f1, f2)
    return out[0, 0]


# ---------------------------------------------------------------------------
# Tiled kernel: grid = (row tiles, col tiles) over the (Np, Np) score matrix.
# Output: one (8, 128) f32 partial-sum block per row tile (resident across j),
# so the row-tile axis can be megacore-parallel; wrapper sums the partials.
# ---------------------------------------------------------------------------
def _l2_cost_sq_tiled_kernel(f1_ref, f2_ref, sq1_ref, sq2_ref, out_ref,
                             rowmax_ref, *, margin, max_violation, tile):
    i = pl.program_id(0)          # row-tile index ("parallel")
    j = pl.program_id(1)          # col-tile index (reduction axis, innermost)
    nj = pl.num_programs(1)

    # Cross term straight into the MXU (NT contraction), f32 accumulation.
    cross = lax.dot_general(f1_ref[...], f2_ref[...], (((1,), (1,)), ((), ())),
                            preferred_element_type=jnp.float32)       # (tile, tile)
    # Squared norms are precomputed in the wrapper: pure broadcast adds here.
    d2 = jnp.maximum(sq1_ref[...] + sq2_ref[...] - 2.0 * cross, 0.0)
    cost = jnp.maximum(jnp.float32(margin) - jnp.sqrt(d2), 0.0)       # unmasked

    def mask_diag(c):
        # Local iotas only; evaluated exclusively on i == j tiles (tm == tn,
        # so the global diagonal only intersects aligned diagonal tiles).
        row = lax.broadcasted_iota(jnp.int32, (tile, tile), 0)
        col = lax.broadcasted_iota(jnp.int32, (tile, tile), 1)
        return jnp.where(row == col, 0.0, c)

    def fold_rows(x):
        # (R, C) -> (8, C): tree-sum vreg-aligned row groups (VALU adds only).
        parts = [x[k * 8:(k + 1) * 8, :] for k in range(x.shape[0] // 8)]
        while len(parts) > 1:
            nxt = [parts[k] + parts[k + 1] for k in range(0, len(parts) - 1, 2)]
            if len(parts) % 2:
                nxt.append(parts[-1])
            parts = nxt
        return parts[0]

    def fold_lanes(s):
        # (8, C) with C a multiple of 128 -> (8, 128): aligned lane-group adds.
        out = s[:, 0:128]
        for k in range(1, s.shape[1] // 128):
            out = out + s[:, k * 128:(k + 1) * 128]
        return out

    if max_violation:
        # Running hardest-negative per row across column tiles.
        @pl.when(j == 0)
        def _init_rowmax():
            rowmax_ref[...] = jnp.zeros_like(rowmax_ref)

        @pl.when(i != j)
        def _update_off_diag():
            rowmax_ref[...] = jnp.maximum(
                rowmax_ref[...], jnp.max(cost, axis=1, keepdims=True))

        @pl.when(i == j)
        def _update_diag():
            rowmax_ref[...] = jnp.maximum(
                rowmax_ref[...], jnp.max(mask_diag(cost), axis=1, keepdims=True))

        @pl.when(j == nj - 1)
        def _finalize():
            rm = rowmax_ref[...]
            s8 = fold_rows(rm * rm)                                    # (8, 1)
            lane = lax.broadcasted_iota(jnp.int32, (8, 128), 1)
            out_ref[...] = jnp.where(lane == 0, s8, 0.0)               # (8, 128)
    else:
        @pl.when(j == 0)
        def _init_acc():
            out_ref[...] = jnp.zeros_like(out_ref)

        @pl.when(i != j)
        def _acc_off_diag():
            out_ref[...] += fold_lanes(fold_rows(cost * cost))

        @pl.when(i == j)
        def _acc_diag():
            cm = mask_diag(cost)
            out_ref[...] += fold_lanes(fold_rows(cm * cm))


def _tiled_cost_sq(f1p, f2p, *, margin, max_violation, tile):
    npad, dp = f1p.shape
    nt = npad // tile

    # Hoisted squared row norms (f32), fed as extra kernel inputs.
    f1f = f1p.astype(jnp.float32)
    f2f = f2p.astype(jnp.float32)
    sq1 = jnp.sum(f1f * f1f, axis=1, keepdims=True)                    # (Np, 1)
    sq2 = jnp.sum(f2f * f2f, axis=1)[None, :]                          # (1, Np)

    # Explicit VMEM budget: f1+f2 double-buffered blocks plus headroom for the
    # (tile,tile) intermediates; stay under v7x's 64 MiB physical VMEM.
    need = 4 * tile * dp * f1p.dtype.itemsize + 8 * tile * tile * 4 + (2 << 20)
    vmem_limit = int(min(max(need, 32 << 20), 48 << 20))

    kernel = functools.partial(
        _l2_cost_sq_tiled_kernel,
        margin=margin, max_violation=max_violation, tile=tile,
    )
    partials = pl.pallas_call(
        kernel,
        out_shape=jax.ShapeDtypeStruct((8 * nt, 128), jnp.float32),
        grid_spec=pltpu.PrefetchScalarGridSpec(
            num_scalar_prefetch=0,
            grid=(nt, nt),
            in_specs=[
                pl.BlockSpec((tile, dp), lambda i, j: (i, 0)),   # f1 row tile
                pl.BlockSpec((tile, dp), lambda i, j: (j, 0)),   # f2 col tile
                pl.BlockSpec((tile, 1), lambda i, j: (i, 0)),    # sq1 rows
                pl.BlockSpec((1, tile), lambda i, j: (0, j)),    # sq2 cols
            ],
            out_specs=pl.BlockSpec((8, 128), lambda i, j: (i, 0)),
            scratch_shapes=[pltpu.VMEM((tile, 1), jnp.float32)],  # row-max scratch
        ),
        compiler_params=pltpu.CompilerParams(
            dimension_semantics=("parallel", "arbitrary"),
            vmem_limit_bytes=vmem_limit),
    )(f1p, f2p, sq1, sq2)
    return jnp.sum(partials)


# ---------------------------------------------------------------------------
# Wrapper-side padding helpers.
# ---------------------------------------------------------------------------
def _pad_lanes(x):
    """Zero-pad the embedding dim to a multiple of 128 lanes (L2-neutral)."""
    d = x.shape[1]
    dp = ((d + 127) // 128) * 128
    if dp != d:
        x = jnp.pad(x, ((0, 0), (0, dp - d)))
    return x


def _pad_features(f1, f2, margin, tile):
    """Lane-pad D to 128 and row-pad N to a multiple of `tile`.

    Padded rows are identical in f1/f2 (zero diagonal distance, masked anyway)
    and are at least `margin + 2` away from every other row, so every
    off-diagonal cost involving a padded row clamps to exactly zero.
    """
    n, d = f1.shape
    f1 = _pad_lanes(f1)
    f2 = _pad_lanes(f2)
    dp = f1.shape[1]
    npad = ((n + tile - 1) // tile) * tile
    if npad != n:
        f1f = f1.astype(jnp.float32)
        f2f = f2.astype(jnp.float32)
        max_norm = jnp.sqrt(jnp.maximum(jnp.max(jnp.sum(f1f * f1f, axis=1)),
                                        jnp.max(jnp.sum(f2f * f2f, axis=1))))
        step = max_norm + jnp.float32(margin) + 2.0
        k = jnp.arange(1, npad - n + 1, dtype=jnp.float32)
        pad_rows = jnp.zeros((npad - n, dp), jnp.float32).at[:, 0].set(step * k)
        pad_rows = pad_rows.astype(f1.dtype)
        f1 = jnp.concatenate([f1, pad_rows], axis=0)
        f2 = jnp.concatenate([f2, pad_rows], axis=0)
    return f1, f2


# ---------------------------------------------------------------------------
# Public entry point
# ---------------------------------------------------------------------------
def l2_contrastive_loss(feature1, feature2, *, margin=0.0, max_violation=False,
                        block_rows=256):
    """Pallas TPU implementation of L2ContrastiveLoss.forward."""
    assert feature1.shape == feature2.shape and feature1.ndim == 2
    assert block_rows % 128 == 0
    n = feature1.shape[0]

    # Diagonal term hoisted out of the kernels: O(N*D), numerically robust
    # (no Gram-form cancellation), negligible next to the N^2*D cross term.
    diffd = feature1.astype(jnp.float32) - feature2.astype(jnp.float32)
    diag_sq_sum = jnp.sum(diffd * diffd)

    if margin <= 0.0:
        # scores >= 0 -> cost_s is identically zero; only the O(N*D) diagonal
        # term remains -> plain XLA reduction, no N^2 kernel needed.
        return diag_sq_sum / (2.0 * n)

    if n <= block_rows:
        f1 = _pad_lanes(feature1)
        f2 = _pad_lanes(feature2)
        cost_sq_sum = _single_block_cost_sq(
            f1, f2, margin=float(margin), max_violation=bool(max_violation))
    else:
        # Tiled path for every non-toy N (no single-block VMEM cliff): pad N up
        # to a tile multiple with zero-contribution rows, divide by the true N.
        f1p, f2p = _pad_features(feature1, feature2, float(margin), block_rows)
        cost_sq_sum = _tiled_cost_sq(
            f1p, f2p, margin=float(margin), max_violation=bool(max_violation),
            tile=block_rows)

    return (cost_sq_sum + diag_sq_sum) / (2.0 * n)


# ---------------------------------------------------------------------------
# Pure-JAX reference mirroring the PyTorch module.
# ---------------------------------------------------------------------------
def _reference_loss(feature1, feature2, margin=0.0, max_violation=False):
    diff = feature1[:, None, :] - feature2[None, :, :]
    scores = jnp.sqrt(jnp.maximum(jnp.sum(diff * diff, axis=-1), 0.0))
    n = feature1.shape[0]
    diag = jnp.diagonal(scores)
    eye = jnp.eye(n, dtype=bool)
    cost_s = jnp.maximum(margin - scores, 0.0)
    cost_s = jnp.where(eye, 0.0, cost_s)
    if max_violation:
        cost_s = jnp.max(cost_s, axis=1)
    return (jnp.sum(cost_s ** 2) + jnp.sum(diag ** 2)) / (2.0 * n)


if __name__ == "__main__":
    key = jax.random.PRNGKey(0)
    k1, k2, k3, k4, k5, k6 = jax.random.split(key, 6)

    # Small case (single fused block): batch N=8, hidden D=32.
    N, D = 8, 32
    f1 = jax.random.normal(k1, (N, D), dtype=jnp.float32)
    f2 = jax.random.normal(k2, (N, D), dtype=jnp.float32)

    # Tiled path: N=256 with 128x128 tiles (2x2 grid).
    N2 = 256
    g1 = jax.random.normal(k3, (N2, D), dtype=jnp.float32)
    g2 = jax.random.normal(k4, (N2, D), dtype=jnp.float32)

    # Ragged N exercising the row-padding path: N=200 -> padded to 256.
    N3 = 200
    h1 = jax.random.normal(k5, (N3, D), dtype=jnp.float32)
    h2 = jax.random.normal(k6, (N3, D), dtype=jnp.float32)

    cases = [
        # (feature1, feature2, margin, max_violation, block_rows or None)
        (f1, f2, 0.2, False, None),   # single block
        (f1, f2, 0.0, False, None),   # margin<=0 -> diag-only plain reduction
        (f1, f2, 0.2, True,  None),   # single block, hardest negative
        (g1, g2, 0.2, False, 128),    # tiled, sum of cost_s^2
        (g1, g2, 0.2, True,  128),    # tiled, running row-max
        (h1, h2, 0.2, False, 128),    # tiled + row padding (200 -> 256)
        (h1, h2, 0.2, True,  128),    # tiled + row padding, hardest negative
    ]

    for a, b, margin, maxv, blk in cases:
        kwargs = dict(margin=margin, max_violation=maxv)
        if blk is not None:
            kwargs["block_rows"] = blk
        out = jax.block_until_ready(l2_contrastive_loss(a, b, **kwargs))
        ref = _reference_loss(a, b, margin=margin, max_violation=maxv)
        assert jnp.allclose(out, ref, rtol=1e-4, atol=1e-5), (
            margin, maxv, blk, float(out), float(ref))

    print("KERNEL_OK")
</pallas_src>

<mosaic_0001>
module attributes {stable_mosaic.version = 11 : i64} {
  func.func @_l2_cost_sq_single_kernel(%arg0: memref<8x128xf32, #tpu.memory_space<vmem>>, %arg1: memref<8x128xf32, #tpu.memory_space<vmem>>, %arg2: memref<1x1xf32, #tpu.memory_space<smem>>) attributes {dimension_semantics = [], scalar_prefetch = 0 : i64, scratch_operands = 0 : i64, tpu.core_type = #tpu.core_type<tc>} {
    %c0 = arith.constant 0 : index
    %c0_0 = arith.constant 0 : index
    %0 = vector.load %arg0[%c0, %c0_0] : memref<8x128xf32, #tpu.memory_space<vmem>>, vector<8x128xf32>
    %c0_1 = arith.constant 0 : index
    %c0_2 = arith.constant 0 : index
    %1 = vector.load %arg1[%c0_1, %c0_2] : memref<8x128xf32, #tpu.memory_space<vmem>>, vector<8x128xf32>
    %2 = arith.mulf %0, %0 : vector<8x128xf32>
    %cst = arith.constant dense<0.000000e+00> : vector<8xf32>
    %3 = vector.multi_reduction <add>, %2, %cst [1] : vector<8x128xf32> to vector<8xf32>
    %4 = vector.shape_cast %3 : vector<8xf32> to vector<8x1xf32>
    %5 = arith.mulf %1, %1 : vector<8x128xf32>
    %cst_3 = arith.constant dense<0.000000e+00> : vector<8xf32>
    %6 = vector.multi_reduction <add>, %5, %cst_3 [1] : vector<8x128xf32> to vector<8xf32>
    %7 = vector.shape_cast %6 : vector<8xf32> to vector<8x1xf32>
    %cst_4 = arith.constant dense<0.000000e+00> : vector<8x8xf32>
    %8 = tpu.matmul %0, %1, %cst_4 {dimension_numbers = #tpu.dot_dimension_numbers<[1], [1], [0], [0], [0, 0, 1, 0], [], []>} : vector<8x128xf32>, vector<8x128xf32>, vector<8x8xf32> -> vector<8x8xf32>
    %9 = tpu.transpose %7, [1, 0] : vector<8x1xf32> -> vector<1x8xf32>
    %10 = vector.broadcast %4 : vector<8x1xf32> to vector<8x8xf32>
    %11 = vector.broadcast %9 : vector<1x8xf32> to vector<8x8xf32>
    %12 = arith.addf %10, %11 : vector<8x8xf32>
    %cst_5 = arith.constant 2.000000e+00 : f32
    %13 = vector.broadcast %cst_5 : f32 to vector<8x8xf32>
    %14 = arith.mulf %13, %8 : vector<8x8xf32>
    %15 = arith.subf %12, %14 : vector<8x8xf32>
    %cst_6 = arith.constant 0.000000e+00 : f32
    %16 = vector.broadcast %cst_6 : f32 to vector<8x8xf32>
    %17 = arith.maximumf %15, %16 : vector<8x8xf32>
    %18 = tpu.iota {dimensions = array<i32: 0>} : vector<8x8xi32>
    %19 = tpu.iota {dimensions = array<i32: 1>} : vector<8x8xi32>
    %20 = arith.cmpi eq, %18, %19 : vector<8x8xi32>
    %21 = math.sqrt %17 : vector<8x8xf32>
    %cst_7 = arith.constant 2.000000e-01 : f32
    %22 = vector.broadcast %cst_7 : f32 to vector<8x8xf32>
    %23 = arith.subf %22, %21 : vector<8x8xf32>
    %cst_8 = arith.constant 0.000000e+00 : f32
    %24 = vector.broadcast %cst_8 : f32 to vector<8x8xf32>
    %25 = arith.maximumf %23, %24 : vector<8x8xf32>
    %cst_9 = arith.constant 0.000000e+00 : f32
    %26 = vector.broadcast %cst_9 : f32 to vector<8x8xf32>
    %27 = arith.select %20, %26, %25 : vector<8x8xi1>, vector<8x8xf32>
    %28 = arith.mulf %27, %27 : vector<8x8xf32>
    %29 = vector.shape_cast %28 : vector<8x8xf32> to vector<1x8x8xf32>
    %cst_10 = arith.constant dense<0.000000e+00> : vector<1xf32>
    %30 = vector.multi_reduction <add>, %29, %cst_10 [1, 2] : vector<1x8x8xf32> to vector<1xf32>
    %31 = vector.shape_cast %30 : vector<1xf32> to vector<1x1x1xf32>
    %32 = vector.extract %31[0, 0, 0] : f32 from vector<1x1x1xf32>
    %c0_11 = arith.constant 0 : index
    %c0_12 = arith.constant 0 : index
    %33 = memref.load %arg2[%c0_11, %c0_12] : memref<1x1xf32, #tpu.memory_space<smem>>
    memref.store %32, %arg2[%c0_11, %c0_12] : memref<1x1xf32, #tpu.memory_space<smem>>
    return
  }
}

</mosaic_0001>

<bundles_post_ra>
// kernel: tpu_custom_call.1
= control target key start
LH: loop header
LB: loop body
LE: loop exit
PB: predicated region body
PF: predicated region fallthrough
CT: control target
= control target key end

     0   :  { %7 = vsyncpa [#allocation3], 0  ;;  %s330_s0 = inlined_call_operand.hbm [shape: f32[8,128], index: 0, kind: input, shape index: {}]   ;;  %s331_s1 = inlined_call_operand.hbm [shape: f32[8,128], index: 1, kind: input, shape index: {}]   ;;  %s332_s2 = inlined_call_operand.hbm [shape: f32[1,1], index: 2, kind: output, shape index: {}]  }
   0x1   :  { %8 = vsyncpa [#allocation6], 0 }
   0x2   :  { %9 = vsyncpa [#allocation4], 0  ;;  %s274_s9 = smov [#allocation2]   ;;  %s275_s11 = smov [#allocation5]  }
   0x3   :  { %s16_s10 = sshll.u32 %s274_s9, 4  ;;  %s26_s12 = sshll.u32 %s275_s11, 4  ;;  %s17_s10 = int_to_ptr.vmem [resolvable:$true] %s16_s10  ;;  %s27_s12 = int_to_ptr.vmem [resolvable:$true] %s26_s12 }
   0x4   :  { %s214_s15 = scalar_lea.hbm %s330_s0, 128 }
   0x5   :  { %p215_p0 = scmp.ne.s32.totalorder %s330_s0, %s214_s15  ;;  %p218_p1 = scmp.lt.u32.totalorder %s214_s15, %s330_s0 }
   0x7   :  { %p220_p2 = pnand %p218_p1, %p215_p0 }
   0x9   :  { %223 = shalt.err (!%p220_p2)
}
   0xa   :  { %s224_s20 = scalar_lea.vmem %s17_s10, 128  ;;  %p229_p4 = scmp.lt.s32.totalorder %s17_s10, %s17_s10 }
   0xb   :  { %p225_p3 = scmp.ne.s32.totalorder %s17_s10, %s224_s20  ;;  %p230_p5 = scmp.lt.s32.totalorder %s224_s20, %s224_s20 }
   0xd   :  { %p231_p6 = por %p230_p5, %p229_p4 }
   0xf   :  { %p232_p7 = pnand %p231_p6, %p225_p3 }
  0x11   :  { %235 = shalt.err (!%p232_p7)
}
  0x12   :  { %19 = dma.hbm_to_vmem [thread:$0]  %s330_s0, 128, %s17_s10, [#allocation3]  }
  0x13   :  { %s236_s25 = scalar_lea.hbm %s331_s1, 128 }
  0x14   :  { %p237_p8 = scmp.ne.s32.totalorder %s331_s1, %s236_s25  ;;  %p240_p9 = scmp.lt.u32.totalorder %s236_s25, %s331_s1 }
  0x16   :  { %p242_p10 = pnand %p240_p9, %p237_p8 }
  0x18   :  { %245 = shalt.err (!%p242_p10)
}
  0x19   :  { %s246_s30 = scalar_lea.vmem %s27_s12, 128  ;;  %p251_p12 = scmp.lt.s32.totalorder %s27_s12, %s27_s12 }
  0x1a   :  { %p247_p11 = scmp.ne.s32.totalorder %s27_s12, %s246_s30  ;;  %p252_p13 = scmp.lt.s32.totalorder %s246_s30, %s246_s30 }
  0x1c   :  { %p253_p0 = por %p252_p13, %p251_p12 }
  0x1e   :  { %p254_p1 = pnand %p253_p0, %p247_p11 }
  0x20   :  { %257 = shalt.err (!%p254_p1)
}
  0x21   :  { %29 = dma.hbm_to_vmem [thread:$0]  %s331_s1, 128, %s27_s12, [#allocation6]  }
  0x22   :  { %268 = dma.done.wait [#allocation3], 128  }
  0x23   :  { %269 = vsyncadd [#allocation3], 4294967168 }
  0x24   :  { %270 = dma.done.wait [#allocation6], 128  }
  0x25   :  { %271 = vsyncadd [#allocation6], 4294967168  ;;  %v276_v0 = vmov 0.0   ;;  %vm277_vm0 = vmmov 0   ;;  %v37_v1 = vld [vmem:[#allocation5] sm:$0xff]  ;;  %v36_v3 = vld [vmem:[#allocation2] sm:$0xff]  ;;  %v146_v8 = vlaneseq }
  0x26   :  { %200 = vmatprep.subr.mxu0 %v276_v0  ;;  %202 = vmatprep.mubr.msk.f32.mxu0 %vm277_vm0, %v276_v0  ;;  %v41_v2 = vmul.f32 %v37_v1, %v37_v1  ;;  %v38_v4 = vmul.f32 %v36_v3, %v36_v3  ;;  %vm170_vm4 = vcmask 64512   ;;  %s258_s6 = scalar_lea.hbm %s332_s2, 16 }
  0x27   :  { %201 = vmatpush3.xpose.msra.mxu0 %v37_v1  ;;  %v147_v9 = vshrl.u32 %v146_v8, 7  ;;  %v157_v20 = vand.u32 127, %v146_v8  ;;  %p259_p2 = scmp.ne.s32.totalorder %s332_s2, %s258_s6  ;;  %p262_p3 = scmp.lt.u32.totalorder %s258_s6, %s332_s2 }
  0x28   :  { %42 = vadd.xlane.f32.xlu0 %v41_v2 }
  0x29   :  { %v148_v10 = vsub.s32 0, %v147_v9  ;;  %vm158_vm3 = vcmp.eq.s32.totalorder %v147_v9, %v157_v20  ;;  %p264_p4 = pnand %p262_p3, %p259_p2 }
  0x2a   :  { %203 = vmatmul.mubr.f32.vlgmr.msra.gmra.mrb[0].mxu0 %v36_v3 }
  0x2c   :  { %39 = vadd.xlane.f32.xlu0 %v38_v4 }
  0xb5   :  { %v43_v5 = vpop.xlane.xlu0 %42 }
  0xb6   :  { %114 = vxpose.xlu1.b32.start.end [1/1] (short) (narrow) %v43_v5, 8 }
  0xb9   :  { %v40_v12 = vpop.xlane.xlu0 %39 }
  0xfd   :  { %v110_v6 = vpop.f32.mrb[0].mxu0 }
  0xfe   :  { %v204_v7 = vpop.f32.mrb[1].mxu0  ;;  %v151_v14 = vmul.f32 2.0, %v110_v6 }
 0x136   :  { %v130_v11 = vpop.trf.xlu1 }
 0x137   :  { %v149_v13 = vrot.slane %v130_v11, %v148_v10 }
 0x139   :  { %v150_v15 = vadd.f32 %v149_v13, %v40_v12 }
 0x13b   :  { %v152_v16 = vsub.f32 %v150_v15, %v151_v14 }
 0x13d   :  { %v153_v17 = vmax.f32 %v152_v16, 0.0 }
 0x13f   :  { %212 = vrsqrt.f32 %v153_v17  ;;  %vm161_vm1 = vcmp.eq.f32.partialorder %v153_v17, inf  ;;  %v164_v21 = vand.u32 2147483648, %v153_v17  ;;  %vm163_vm2 = vcmp.eq.f32.partialorder %v153_v17, 0.0 }
 0x149   :  { %v213_v18 = vpop.eup %212 }
 0x14a   :  { %v160_v19 = vmul.f32 %v213_v18, %v153_v17 }
 0x14c   :  { %v162_v22 = vsel %vm161_vm1, %v153_v17, %v160_v19 }
 0x14d   :  { %v165_v23 = vsel %vm163_vm2, %v164_v21, %v162_v22 }
 0x14e   :  { %v166_v24 = vsub.f32 0.2, %v165_v23 }
 0x150   :  { %v167_v25 = vmax.f32 %v166_v24, 0.0 }
 0x152   :  { %v168_v26 = vsel %vm158_vm3, 0.0, %v167_v25 }
 0x153   :  { %v169_v27 = vmul.f32 %v168_v26, %v168_v26 }
 0x155   :  { %v171_v28 = vsel %vm170_vm4, %v169_v27, 0.0 }
 0x156   :  { %172 = vadd.xlane.f32.xlu1 %v171_v28 }
 0x1e3   :  { %v173_v29 = vpop.xlane.xlu1 %172 }
 0x1e4   :  { %v174_v30 = vrot.slane %v173_v29, 4 }
 0x1e6   :  { %v175_v31 = vadd.f32 %v174_v30, %v173_v29 }
 0x1e8   :  { %v176_v32 = vrot.slane %v175_v31, 2 }
 0x1ea   :  { %v177_v33 = vadd.f32 %v176_v32, %v175_v31 }
 0x1ec   :  { %v178_v34 = vrot.slane %v177_v33, 1 }
 0x1ee   :  { %v179_v35 = vadd.f32 %v178_v34, %v177_v33 }
 0x1f0   :  { %205 = vpush %v179_v35 }
 0x221   :  { %s206_s1 = spop %205 }
 0x222   :  { %182 = sst [smem:[#allocation7]] %s206_s1 }
 0x223   :  { %267 = shalt.err (!%p264_p4)
}
 0x224   :  { %s278_s11 = smov [#allocation7]  }
 0x225   :  { %190 = dma.smem_to_hbm %s278_s11, 16, %s332_s2, [#allocation4]  }
 0x226   :  { %272 = dma.done.wait [#allocation4], 16  }
 0x227   :  { %273 = vsyncadd [#allocation4], 4294967280 }
 0x228   :  { %194 = sfence }
 0x229   :  { %195 = vsyncpa [#allocation3], 1 }
 0x22a   :  { %196 = vsyncpa [#allocation6], 1 }
 0x22b   :  { %197 = vsyncpa [#allocation4], 1 }

</bundles_post_ra>
